<compile_context>
chip_gen: v5e
topology: v5e:2x2
jax: 0.10.0
libtpu: 0.0.40
codegen_flags: <defaults>
</compile_context>

<pallas_src>
import jax
import jax.numpy as jnp
from jax.experimental import pallas as pl
from jax.experimental.pallas import tpu as pltpu


def _round_up(x, m):
    return ((x + m - 1) // m) * m


# ----------------------------- Pallas kernel ------------------------------ #
def _film_kernel(x_ref, w_ref, o_ref):
    """out = x_aug @ W_slab  (bias / reg / +1 offsets pre-folded into W)."""
    o_ref[...] = jnp.dot(
        x_ref[...], w_ref[...], preferred_element_type=jnp.float32
    )


# ------------------------- FilmAdapter (JAX side) -------------------------- #
class FilmAdapterPallas:
    """JAX/Pallas port of FilmAdapter with a FiLM hyper-network inner layer."""

    MAX_TN = 2048  # N-tile width (f32 lanes) once the fused slab gets large

    def __init__(self, adaptation_config, task_dim, key,
                 weight_dtype=jnp.bfloat16):
        self.num_maps = adaptation_config["num_maps_per_layer"]
        self.num_blocks = adaptation_config["num_blocks_per_layer"]
        self.task_dim = task_dim
        self.num_target_layers = len(self.num_maps)
        self.num_generated_params = 0
        self.weight_dtype = weight_dtype
        self._init_params(key)
        # One jitted call per forward: kernel + static fan-out slicing.
        self._forward = jax.jit(self._forward_impl)

    def _init_params(self, key):
        ws, bs, regs, offs = [], [], [], []
        self.layer_meta = []  # (column offset, num_blocks, num_maps)
        col = 0
        for num_maps, num_blocks in zip(self.num_maps, self.num_blocks):
            for _blk in range(num_blocks):
                for which in ("gamma", "beta"):
                    key, kw, kb, kr = jax.random.split(key, 4)
                    ws.append(
                        jax.random.normal(kw, (self.task_dim, num_maps), jnp.float32)
                        * (1.0 / jnp.sqrt(self.task_dim))
                    )
                    bs.append(jax.random.normal(kb, (num_maps,), jnp.float32) * 0.01)
                    regs.append(jax.random.normal(kr, (num_maps,), jnp.float32) * 0.001)
                    offs.append(
                        jnp.ones((num_maps,), jnp.float32)
                        if which == "gamma"
                        else jnp.zeros((num_maps,), jnp.float32)
                    )
                    self.num_generated_params += num_maps
            self.layer_meta.append((col, num_blocks, num_maps))
            col += 2 * num_blocks * num_maps
        self.total_cols = col

        # Original (unfolded) parameters, kept only for the reference check.
        w = jnp.concatenate(ws, axis=1)      # (K, Ntot)
        b = jnp.concatenate(bs, axis=0)      # (Ntot,)
        reg = jnp.concatenate(regs, axis=0)  # (Ntot,)
        off = jnp.concatenate(offs, axis=0)  # (Ntot,)
        self.ref_params = dict(w=w, b=b, reg=reg, off=off)

        # Fold reg/off:  (x@W + b)*reg + off == x@(W*reg) + (b*reg + off)
        w_f = w * reg[None, :]
        b_f = b * reg + off

        # Lane-dense N padding + tile selection (grid over N for big slabs).
        if self.total_cols <= self.MAX_TN:
            Np = _round_up(max(self.total_cols, 1), 128)
            TN = Np
        else:
            TN = self.MAX_TN
            Np = _round_up(self.total_cols, TN)

        # K padding done ONCE at init: task_dim real rows + 1 bias row, rounded
        # for bf16 sublane packing.  No per-call activation padding.
        K = self.task_dim
        Kp = _round_up(K + 1, 16)

        slab = jnp.zeros((Kp, Np), jnp.float32)
        slab = slab.at[:K, : self.total_cols].set(w_f)
        slab = slab.at[K, : self.total_cols].set(b_f)   # folded-bias row
        self.w_pad = slab.astype(self.weight_dtype)     # bf16: halves DMA bytes

        # Constant tail appended to x: [1, 0, ..., 0] selects the bias row.
        self.x_tail = (
            jnp.zeros((1, Kp - K), self.weight_dtype).at[0, 0].set(1.0)
        )
        self.Kp, self.Np, self.TN = Kp, Np, TN

    def _forward_impl(self, x, w_pad, x_tail):
        B = x.shape[0]
        Kp, Np, TN = self.Kp, self.Np, self.TN

        # Only per-call prep: append the tiny constant bias lane (fused by XLA).
        x_aug = jnp.concatenate(
            [x.astype(self.weight_dtype),
             jnp.broadcast_to(x_tail, (B, Kp - self.task_dim))],
            axis=1,
        )

        fused = pl.pallas_call(
            _film_kernel,
            out_shape=jax.ShapeDtypeStruct((B, Np), jnp.float32),
            grid=(Np // TN,),
            in_specs=[
                # Full-array activation block (exempt from (8,128) rule).
                pl.BlockSpec((B, Kp), lambda j: (0, 0)),
                # Lane-dense weight tile, streamed along N.
                pl.BlockSpec((Kp, TN), lambda j: (0, j)),
            ],
            out_specs=pl.BlockSpec((B, TN), lambda j: (0, j)),
            compiler_params=pltpu.CompilerParams(
                dimension_semantics=("parallel",)  # shards N across v7x's 2 TCs
            ),
        )(x_aug, w_pad)

        # Per-layer / per-block fan-out (static slices, fused inside the jit).
        fused = fused[0]  # module is called with a single task embedding
        outputs = []
        for col, nb, m in self.layer_meta:
            chunk = fused[col : col + 2 * nb * m].reshape(nb, 2, m)
            outputs.append(
                [{"gamma": chunk[blk, 0], "beta": chunk[blk, 1]} for blk in range(nb)]
            )
        return outputs

    def __call__(self, x):
        # x: (1, task_dim) task embedding. One jitted dispatch for everything.
        return self._forward(x, self.w_pad, self.x_tail)


# ------------------------------ reference ---------------------------------- #
def reference_forward(adapter, x):
    """Pure-JAX reference using the ORIGINAL (unfolded, f32) W, b, reg, off."""
    p = adapter.ref_params
    fused = ((x.astype(jnp.float32) @ p["w"] + p["b"]) * p["reg"] + p["off"])[0]
    outputs = []
    for col, nb, m in adapter.layer_meta:
        chunk = fused[col : col + 2 * nb * m].reshape(nb, 2, m)
        outputs.append(
            [{"gamma": chunk[blk, 0], "beta": chunk[blk, 1]} for blk in range(nb)]
        )
    return outputs


if __name__ == "__main__":
    key = jax.random.PRNGKey(0)
    k_param, k_x = jax.random.split(key)

    adaptation_config = {
        "num_maps_per_layer": [4, 8],
        "num_blocks_per_layer": [2, 2],
    }
    task_dim = 32

    adapter = FilmAdapterPallas(adaptation_config, task_dim=task_dim, key=k_param)

    x = jax.random.normal(k_x, (1, task_dim), jnp.float32)  # task embedding

    out = adapter(x)
    out = jax.tree_util.tree_map(jax.block_until_ready, out)

    # bf16 weight slab -> loosened tolerance vs the f32 reference.
    ref = reference_forward(adapter, x)
    for layer_out, layer_ref in zip(out, ref):
        for blk_out, blk_ref in zip(layer_out, layer_ref):
            assert jnp.allclose(blk_out["gamma"], blk_ref["gamma"], atol=1e-2, rtol=1e-2)
            assert jnp.allclose(blk_out["beta"], blk_ref["beta"], atol=1e-2, rtol=1e-2)

    print("KERNEL_OK")
</pallas_src>

<mosaic_0001>
module attributes {stable_mosaic.version = 11 : i64} {
  func.func @_film_kernel(%arg0: i32, %arg1: memref<1x48xbf16, #tpu.memory_space<vmem>>, %arg2: memref<48x128xbf16, #tpu.memory_space<vmem>>, %arg3: memref<1x128xf32, #tpu.memory_space<vmem>>) attributes {dimension_semantics = [#tpu.dimension_semantics<parallel>], iteration_bounds = array<i64: 1>, scalar_prefetch = 0 : i64, scratch_operands = 0 : i64, tpu.core_type = #tpu.core_type<tc>, window_params = [{pipeline_mode = #tpu.pipeline_mode<synchronous>, transform_indices = @transform_0, window_bounds = array<i64: 1, 48>}, {transform_indices = @transform_1, window_bounds = array<i64: 48, 128>}, {transform_indices = @transform_2, window_bounds = array<i64: 1, 128>}]} {
    %c0 = arith.constant 0 : index
    %c0_0 = arith.constant 0 : index
    %0 = vector.load %arg1[%c0, %c0_0] : memref<1x48xbf16, #tpu.memory_space<vmem>>, vector<1x48xbf16>
    %c0_1 = arith.constant 0 : index
    %c0_2 = arith.constant 0 : index
    %1 = vector.load %arg2[%c0_1, %c0_2] : memref<48x128xbf16, #tpu.memory_space<vmem>>, vector<48x128xbf16>
    %cst = arith.constant dense<0.000000e+00> : vector<1x128xf32>
    %2 = tpu.matmul %0, %1, %cst {dimension_numbers = #tpu.dot_dimension_numbers<[1], [0], [0], [1], [0, 0, 1, 1], [], []>} : vector<1x48xbf16>, vector<48x128xbf16>, vector<1x128xf32> -> vector<1x128xf32>
    %c0_3 = arith.constant 0 : index
    %c0_4 = arith.constant 0 : index
    %3 = vector.load %arg3[%c0_3, %c0_4] : memref<1x128xf32, #tpu.memory_space<vmem>>, vector<1x128xf32>
    tpu.vector_store %arg3[%c0_3, %c0_4], %2 {strides = array<i32>} : memref<1x128xf32, #tpu.memory_space<vmem>>, vector<1x128xf32>,
    return
  }
  func.func @transform_0(%arg0: i32) -> (i32, i32) {
    %c0_i32 = arith.constant 0 : i32
    %c0_i32_0 = arith.constant 0 : i32
    %c0_i32_1 = arith.constant 0 : i32
    return %c0_i32, %c0_i32_0 : i32, i32
  }
  func.func @transform_1(%arg0: i32) -> (i32, i32) {
    %c0_i32 = arith.constant 0 : i32
    %c0_i32_0 = arith.constant 0 : i32
    return %c0_i32, %arg0 : i32, i32
  }
  func.func @transform_2(%arg0: i32) -> (i32, i32) {
    %c0_i32 = arith.constant 0 : i32
    %c0_i32_0 = arith.constant 0 : i32
    return %c0_i32, %arg0 : i32, i32
  }
}

</mosaic_0001>

<bundles_post_ra>
// kernel: _forward_impl.1
= control target key start
LH: loop header
LB: loop body
LE: loop exit
PB: predicated region body
PF: predicated region fallthrough
CT: control target
= control target key end

     0   :  { %7 = vsyncpa [#allocation3], 0  ;;  %s121_s12 = smov [#allocation2]   ;;  %s122_s14 = smov 64   ;;  %s148_s0 = inlined_call_operand.vmem [shape: bf16[1,48], index: 0, kind: input, shape index: {}]   ;;  %s149_s1 = inlined_call_operand.hbm [shape: bf16[48,128], index: 1, kind: input, shape index: {}]   ;;  %s150_s2 = inlined_call_operand.vmem [shape: f32[1,128], index: 2, kind: output, shape index: {}]  }
   0x1   :  { %s14_s11 = sshll.u32 %s149_s1, 4  ;;  %s16_s13 = sshll.u32 %s121_s12, 4  ;;  %s15_s11 = int_to_ptr.hbm [resolvable:$true] %s14_s11  ;;  %s17_s13 = int_to_ptr.vmem [resolvable:$true] %s16_s13 }
   0x2   :  { %s123_s15 = smov 4  }
   0x3   :  { %22 = dma.hbm_to_vmem [thread:$0]  %s15_s11, 384, %s17_s13, [#allocation3], %s122_s14, %s122_s14, %s123_s15  }
   0x4   :  { %119 = dma.done.wait [#allocation3], 384  }
   0x5   :  { %120 = vsyncadd [#allocation3], 4294966912  ;;  %v91_v0 = vld [vmem:[#allocation2 + $0x10] sm:$0xff]  ;;  %v90_v1 = vld [vmem:[#allocation2 + $0x8] sm:$0xff]  ;;  %vm53_vm0 = vcmask 392192  }
   0x6   :  { %62 = vmatpush.bf16.msra.mxu0 %v91_v0  ;;  %v89_v2 = vld [vmem:[#allocation2] sm:$0xff] }
   0x7   :  { %v28_v3 = vld [vmem:[%s148_s0] sm:$0x1] }
   0xa   :  { %63 = vmatpush.bf16.msra.mxu0 %v90_v1 }
   0xe   :  { %64 = vmatpush.bf16.msra.mxu0 %v89_v2 }
  0x11   :  { %88 = vmatmul.msk.bf16.vlgmr.msra.gmra.mxu0 %vm53_vm0, %v28_v3 }
  0x8e   :  { %v66_v4 = vpop.f32.mrf.mxu0 }
  0x8f   :  { %70 = vst [vmem:[%s150_s2] sm:$0x1] %v66_v4 }
  0x96   :  { %v68_v5 = vpop.f32.mrf.mxu0 }
  0x97   :  { %75 = vsyncpa [#allocation3], 1 }

</bundles_post_ra>
